<compile_context>
chip_gen: v7x
topology: tpu7x:2x2x1
jax: 0.10.0
libtpu: 0.0.40
codegen_flags: <defaults>
</compile_context>

<pallas_src>
import functools

import jax
import jax.numpy as jnp
from jax.experimental import pallas as pl
from jax.experimental.pallas import tpu as pltpu


def _attention_kernel(x_ref, gamma_ref, beta_ref, wqkv_ref, wo_ref, bo_ref,
                      mask_ref, o_ref, *, heads: int, dim_head: int, eps: float,
                      group_lanes: int, mxu_dtype, approx_recip: bool):
    D, M = x_ref.shape                       # features on sublanes, tokens on lanes
    H, dh = heads, dim_head
    inner = H * dh
    G = group_lanes                          # tokens per attention group (<= M)
    n_groups = M // G

    # ---- LayerNorm over the feature axis (= sublanes); tokens stay dense on lanes.
    x = x_ref[...].astype(jnp.float32)                         # (D, M)
    mean = jnp.mean(x, axis=0, keepdims=True)                  # (1, M)
    xc = x - mean
    var = jnp.mean(xc * xc, axis=0, keepdims=True)
    xn = xc * jax.lax.rsqrt(var + eps) * gamma_ref[...] + beta_ref[...]   # (D, M)

    # ---- Fused q/k/v projection: one MXU contraction, K = D, 3*inner output rows.
    qkv = jnp.dot(wqkv_ref[...], xn.astype(mxu_dtype),
                  preferred_element_type=jnp.float32)          # (3*inner, M) f32
    # Sublane-tile-aligned split into per-head (dh, M) row blocks (free reshape).
    qkv = qkv.reshape(3 * H, dh, M)
    q_t = qkv[0:H]                                             # (H, dh, M)
    k_t = qkv[H:2 * H]                                         # (H, dh, M)
    v_t = qkv[2 * H:3 * H]                                     # (H, dh, M)

    neg = mask_ref[...]                                        # (G, G): 0 / -1e30

    ctx_parts = []
    for g in range(n_groups):                                  # static unroll
        lo, hi = g * G, (g + 1) * G
        q_g = q_t[:, :, lo:hi]                                 # (H, dh, G)
        k_g = k_t[:, :, lo:hi]
        v_g = v_t[:, :, lo:hi]

        # One small transpose so the score matmul is the canonical batched form.
        qh = jnp.swapaxes(q_g, 1, 2)                           # (H, G, dh)
        s = jnp.einsum('hqd,hdk->hqk', qh.astype(mxu_dtype),
                       k_g.astype(mxu_dtype),
                       preferred_element_type=jnp.float32)     # (H, G, G) f32
        s = s + neg                                            # mask cross-element pairs
        s = s - jnp.max(s, axis=-1, keepdims=True)
        e = jnp.exp(s)
        denom = jnp.sum(e, axis=-1, keepdims=True)
        attn = e * pl.reciprocal(denom, approx=approx_recip)   # masked cols are exactly 0

        ctx_g = jnp.einsum('hdk,hqk->hdq', v_g.astype(mxu_dtype),
                           attn.astype(mxu_dtype),
                           preferred_element_type=jnp.float32)  # (H, dh, G) f32
        ctx_parts.append(ctx_g.reshape(inner, G))              # free (tile-aligned merge)

    ctx = ctx_parts[0] if n_groups == 1 else jnp.concatenate(ctx_parts, axis=-1)  # (inner, M)

    # ---- Output projection: single (D, inner) @ (inner, M) contraction + bias.
    y = jnp.dot(wo_ref[...], ctx.astype(mxu_dtype),
                preferred_element_type=jnp.float32) + bo_ref[...]                 # (D, M)
    o_ref[...] = y.astype(o_ref.dtype)                         # dense (lane-wide) store


def _tpu_vmem_capacity_bytes():
    """Physical VMEM per TensorCore (64 MiB on v7x, 128 MiB on v5e/v6e)."""
    try:
        info = pltpu.get_tpu_info()
        cap = getattr(info, "vmem_capacity_bytes", None)
        if cap:
            return int(cap)
    except Exception:
        pass
    return 64 * 1024 * 1024      # conservative default (v7x)


def _pick_batch_tile(B, N, D, heads, dim_head, *, vmem_budget_bytes,
                     min_grid_steps=2):
    """Pick Bt (batch elements per grid step).

    Constraints: Bt | B, and Bt*N is either the full token count or a multiple
    of 128 (lane-dense blocks).  Preference: at least `min_grid_steps` grid
    steps (two v7x TensorCores), 128..512 token rows per step, and a
    padding-aware f32 working set under the VMEM budget.
    """
    inner = heads * dim_head
    lane = 128

    def rup(v, m):
        return ((v + m - 1) // m) * m

    def step_bytes(bt):
        m = bt * N
        mp = rup(m, lane)
        g_el = min(bt, max(1, lane // N))
        while bt % g_el:
            g_el -= 1
        g = g_el * N
        gp = rup(g, lane)
        f32 = 4
        act = (D + 3 * inner + inner + D) * mp * f32          # xn, qkv, ctx, y slabs
        q_t = heads * max(g, 8) * rup(dim_head, lane) * f32   # transposed q (lane-padded)
        scores = 3 * heads * rup(g, 8) * gp * f32             # s, exp, attn per group
        io = 2 * 2 * D * mp * f32                             # double-buffered x / out tiles
        const = 2 * (4 * inner * rup(D, lane) + rup(g, 8) * gp + 3 * D * lane) * f32
        return int(1.3 * (act + q_t + scores + io + const))

    divisors = [d for d in range(1, B + 1) if B % d == 0]
    cands = [d for d in divisors if (d * N) % lane == 0 or d == B]
    fit = [d for d in cands if step_bytes(d) <= vmem_budget_bytes] or [min(cands)]

    good = [d for d in fit if lane <= d * N <= 4 * lane and B // d >= min_grid_steps]
    if good:
        return max(good)
    dense_multi = [d for d in fit if d * N >= lane and B // d >= min_grid_steps]
    if dense_multi:
        return min(dense_multi)
    dense = [d for d in fit if d * N >= lane]
    if dense:
        return min(dense)
    return max(fit)              # tiny problems (e.g. the demo): one step, biggest tile


def attention_forward(x, gamma, beta, w_qkv, w_out, b_out, *, heads, dim_head,
                      mxu_dtype=jnp.float32, batch_tile=None):
    """ViT Attention forward.  x: (B, N, D) -> (B, N, D).

    w_qkv: (D, 3*heads*dim_head) stored (in, out), no bias.  w_out: (inner, D),
    b_out: (D,).  mxu_dtype: f32 (exact) or bf16 (MXU fast path on v5e/v6e/v7x;
    accumulation, LayerNorm and softmax stay f32).
    """
    B, N, D = x.shape
    inner = heads * dim_head
    assert w_qkv.shape == (D, 3 * inner) and w_out.shape == (inner, D)
    scale = dim_head ** (-0.5)

    cap = _tpu_vmem_capacity_bytes()
    vmem_budget = min(int(cap * 0.4), 96 * 1024 * 1024)
    vmem_limit = min(int(cap * 0.7), 112 * 1024 * 1024)

    Bt = batch_tile if batch_tile is not None else _pick_batch_tile(
        B, N, D, heads, dim_head, vmem_budget_bytes=vmem_budget)
    assert B % Bt == 0, f"batch tile {Bt} must divide B={B}"
    assert Bt == B or (Bt * N) % 128 == 0, "tile must be lane-dense or cover all tokens"
    M = Bt * N

    # Attention group: up to 128 tokens (16 batch elements at N=8) per group so
    # the (G, G) score/softmax block is lane-dense; mask kills cross-element pairs.
    g_elems = min(Bt, max(1, 128 // N)) if N <= 128 else 1
    while Bt % g_elems:
        g_elems -= 1
    G = g_elems * N
    blk = jnp.arange(G, dtype=jnp.int32) // N
    neg_mask = jnp.where(blk[:, None] == blk[None, :],
                         jnp.float32(0.0), jnp.float32(-1e30))          # (G, G)

    # ---- Layout plumbing in XLA (sanctioned: not compute hoisting) ----------
    x_t = x.reshape(B * N, D).T                                          # (D, B*N)
    wq, wk, wv = jnp.split(w_qkv, 3, axis=-1)                            # (D, inner) each
    # Fused, transposed qkv weight: rows = [q (head-major, scaled) | k | v].
    wqkv_t = jnp.concatenate([wq * scale, wk, wv], axis=-1).T.astype(mxu_dtype)   # (3*inner, D)
    wo_t = w_out.T.astype(mxu_dtype)                                     # (D, inner)
    gamma_c = gamma.reshape(D, 1).astype(jnp.float32)
    beta_c = beta.reshape(D, 1).astype(jnp.float32)
    bo_c = b_out.reshape(D, 1).astype(jnp.float32)

    kernel = functools.partial(
        _attention_kernel, heads=heads, dim_head=dim_head, eps=1e-5,
        group_lanes=G, mxu_dtype=mxu_dtype,
        approx_recip=(mxu_dtype != jnp.float32))

    y_t = pl.pallas_call(
        kernel,
        out_shape=jax.ShapeDtypeStruct((D, B * N), x.dtype),
        grid_spec=pltpu.PrefetchScalarGridSpec(
            num_scalar_prefetch=0,
            grid=(B // Bt,),
            in_specs=[
                pl.BlockSpec((D, M), lambda b: (0, b)),                  # x^T (lane-dense)
                pl.BlockSpec((D, 1), lambda b: (0, 0)),                  # gamma (per-sublane)
                pl.BlockSpec((D, 1), lambda b: (0, 0)),                  # beta
                pl.BlockSpec((3 * inner, D), lambda b: (0, 0)),          # fused qkv weight^T
                pl.BlockSpec((D, inner), lambda b: (0, 0)),              # out weight^T
                pl.BlockSpec((D, 1), lambda b: (0, 0)),                  # out bias
                pl.BlockSpec((G, G), lambda b: (0, 0)),                  # additive group mask
            ],
            out_specs=pl.BlockSpec((D, M), lambda b: (0, b)),            # y^T (lane-dense)
        ),
        compiler_params=pltpu.CompilerParams(
            dimension_semantics=("parallel",),        # shards across v7x's two TCs
            vmem_limit_bytes=vmem_limit,              # generation-aware (64/128 MiB phys)
        ),
    )(x_t, gamma_c, beta_c, wqkv_t, wo_t, bo_c, neg_mask)

    return y_t.T.reshape(B, N, D)


def attention_reference(x, gamma, beta, w_qkv, w_out, b_out, *, heads, dim_head):
    """Pure-JAX f32 reference mirroring the PyTorch forward."""
    B, N, D = x.shape
    inner = heads * dim_head
    mean = jnp.mean(x, axis=-1, keepdims=True)
    var = jnp.mean((x - mean) ** 2, axis=-1, keepdims=True)
    xn = (x - mean) / jnp.sqrt(var + 1e-5) * gamma + beta
    qkv = xn @ w_qkv
    q, k, v = jnp.split(qkv, 3, axis=-1)

    def split_heads(t):
        return t.reshape(B, N, heads, dim_head).transpose(0, 2, 1, 3)

    q, k, v = split_heads(q), split_heads(k), split_heads(v)
    dots = jnp.einsum("bhqd,bhkd->bhqk", q, k) * (dim_head ** -0.5)
    attn = jax.nn.softmax(dots, axis=-1)
    out = jnp.einsum("bhqk,bhkd->bhqd", attn, v)
    out = out.transpose(0, 2, 1, 3).reshape(B, N, inner)
    return out @ w_out + b_out


if __name__ == "__main__":
    # Small shapes: dim=32, heads=4, dim_head=8 -> inner_dim=32; project_out=True.
    B, N, D = 2, 8, 32
    heads, dim_head = 4, 8
    inner = heads * dim_head

    key = jax.random.PRNGKey(0)
    kx, kqkv, kout, kbout = jax.random.split(key, 4)

    x = jax.random.normal(kx, (B, N, D), dtype=jnp.float32)
    gamma = jnp.ones((D,), dtype=jnp.float32)            # nn.LayerNorm init
    beta = jnp.zeros((D,), dtype=jnp.float32)
    # Linear weights stored as (in, out) so forward is x @ W.
    w_qkv = jax.random.normal(kqkv, (D, 3 * inner), dtype=jnp.float32) * 0.05
    w_out = jax.random.normal(kout, (inner, D), dtype=jnp.float32) * 0.05
    b_out = jax.random.normal(kbout, (D,), dtype=jnp.float32) * 0.01

    y_ref = attention_reference(x, gamma, beta, w_qkv, w_out, b_out,
                                heads=heads, dim_head=dim_head)

    # Exact (f32 MXU ingest) path -- matches the PyTorch module's precision.
    y = attention_forward(x, gamma, beta, w_qkv, w_out, b_out,
                          heads=heads, dim_head=dim_head,
                          mxu_dtype=jnp.float32)
    y = jax.block_until_ready(y)
    assert y.shape == (B, N, D)
    assert jnp.allclose(y, y_ref, atol=1e-4, rtol=1e-4), \
        f"f32 max err {jnp.max(jnp.abs(y - y_ref))}"

    # bf16 MXU-ingest fast path (v5e/v6e/v7x): f32 accumulation + f32 softmax,
    # approximate (EUP) reciprocal for the softmax normalization.
    y_bf16 = attention_forward(x, gamma, beta, w_qkv, w_out, b_out,
                               heads=heads, dim_head=dim_head,
                               mxu_dtype=jnp.bfloat16)
    y_bf16 = jax.block_until_ready(y_bf16)
    assert jnp.allclose(y_bf16, y_ref, atol=5e-2, rtol=5e-2), \
        f"bf16 max err {jnp.max(jnp.abs(y_bf16 - y_ref))}"

    # TODO(synk): nn.Dropout (p=0.0) is the identity in this forward and is not
    # implemented as a kernel op.
    print("KERNEL_OK")
</pallas_src>

<mosaic_0001>
module attributes {stable_mosaic.version = 11 : i64} {
  func.func @_attention_kernel(%arg0: i32, %arg1: memref<32x16xf32, #tpu.memory_space<vmem>>, %arg2: memref<32x1xf32, #tpu.memory_space<vmem>>, %arg3: memref<32x1xf32, #tpu.memory_space<vmem>>, %arg4: memref<96x32xf32, #tpu.memory_space<vmem>>, %arg5: memref<32x32xf32, #tpu.memory_space<vmem>>, %arg6: memref<32x1xf32, #tpu.memory_space<vmem>>, %arg7: memref<16x16xf32, #tpu.memory_space<vmem>>, %arg8: memref<32x16xf32, #tpu.memory_space<vmem>>) attributes {dimension_semantics = [#tpu.dimension_semantics<parallel>], iteration_bounds = array<i64: 1>, scalar_prefetch = 0 : i64, scratch_operands = 0 : i64, tpu.core_type = #tpu.core_type<tc>, window_params = [{transform_indices = @transform_0, window_bounds = array<i64: 32, 16>}, {pipeline_mode = #tpu.pipeline_mode<synchronous>, transform_indices = @transform_1, window_bounds = array<i64: 32, 1>}, {pipeline_mode = #tpu.pipeline_mode<synchronous>, transform_indices = @transform_2, window_bounds = array<i64: 32, 1>}, {pipeline_mode = #tpu.pipeline_mode<synchronous>, transform_indices = @transform_3, window_bounds = array<i64: 96, 32>}, {pipeline_mode = #tpu.pipeline_mode<synchronous>, transform_indices = @transform_4, window_bounds = array<i64: 32, 32>}, {pipeline_mode = #tpu.pipeline_mode<synchronous>, transform_indices = @transform_5, window_bounds = array<i64: 32, 1>}, {pipeline_mode = #tpu.pipeline_mode<synchronous>, transform_indices = @transform_6, window_bounds = array<i64: 16, 16>}, {transform_indices = @transform_7, window_bounds = array<i64: 32, 16>}]} {
    %c0 = arith.constant 0 : index
    %c0_0 = arith.constant 0 : index
    %0 = vector.load %arg1[%c0, %c0_0] : memref<32x16xf32, #tpu.memory_space<vmem>>, vector<32x16xf32>
    %cst = arith.constant dense<0.000000e+00> : vector<16xf32>
    %1 = vector.multi_reduction <add>, %0, %cst [0] : vector<32x16xf32> to vector<16xf32>
    %2 = vector.shape_cast %1 : vector<16xf32> to vector<1x16xf32>
    %cst_1 = arith.constant 3.200000e+01 : f32
    %3 = vector.broadcast %cst_1 : f32 to vector<1x16xf32>
    %4 = arith.divf %2, %3 : vector<1x16xf32>
    %5 = vector.broadcast %4 : vector<1x16xf32> to vector<32x16xf32>
    %6 = arith.subf %0, %5 : vector<32x16xf32>
    %7 = arith.mulf %6, %6 : vector<32x16xf32>
    %cst_2 = arith.constant dense<0.000000e+00> : vector<16xf32>
    %8 = vector.multi_reduction <add>, %7, %cst_2 [0] : vector<32x16xf32> to vector<16xf32>
    %9 = vector.shape_cast %8 : vector<16xf32> to vector<1x16xf32>
    %cst_3 = arith.constant 3.200000e+01 : f32
    %10 = vector.broadcast %cst_3 : f32 to vector<1x16xf32>
    %11 = arith.divf %9, %10 : vector<1x16xf32>
    %cst_4 = arith.constant 9.99999974E-6 : f32
    %12 = vector.broadcast %cst_4 : f32 to vector<1x16xf32>
    %13 = arith.addf %11, %12 : vector<1x16xf32>
    %14 = math.rsqrt %13 : vector<1x16xf32>
    %15 = vector.broadcast %14 : vector<1x16xf32> to vector<32x16xf32>
    %16 = arith.mulf %6, %15 : vector<32x16xf32>
    %c0_5 = arith.constant 0 : index
    %c0_6 = arith.constant 0 : index
    %17 = vector.load %arg2[%c0_5, %c0_6] : memref<32x1xf32, #tpu.memory_space<vmem>>, vector<32x1xf32>
    %18 = vector.broadcast %17 : vector<32x1xf32> to vector<32x16xf32>
    %19 = arith.mulf %16, %18 : vector<32x16xf32>
    %c0_7 = arith.constant 0 : index
    %c0_8 = arith.constant 0 : index
    %20 = vector.load %arg3[%c0_7, %c0_8] : memref<32x1xf32, #tpu.memory_space<vmem>>, vector<32x1xf32>
    %21 = vector.broadcast %20 : vector<32x1xf32> to vector<32x16xf32>
    %22 = arith.addf %19, %21 : vector<32x16xf32>
    %c0_9 = arith.constant 0 : index
    %c0_10 = arith.constant 0 : index
    %23 = vector.load %arg4[%c0_9, %c0_10] : memref<96x32xf32, #tpu.memory_space<vmem>>, vector<96x32xf32>
    %cst_11 = arith.constant dense<0.000000e+00> : vector<96x16xf32>
    %24 = tpu.matmul %23, %22, %cst_11 {dimension_numbers = #tpu.dot_dimension_numbers<[1], [0], [0], [1], [0, 0, 1, 1], [], []>} : vector<96x32xf32>, vector<32x16xf32>, vector<96x16xf32> -> vector<96x16xf32>
    %25 = vector.shape_cast %24 : vector<96x16xf32> to vector<12x8x16xf32>
    %26 = vector.extract_strided_slice %25 {offsets = [0, 0, 0], sizes = [4, 8, 16], strides = [1, 1, 1]} : vector<12x8x16xf32> to vector<4x8x16xf32>
    %27 = vector.extract_strided_slice %25 {offsets = [4, 0, 0], sizes = [4, 8, 16], strides = [1, 1, 1]} : vector<12x8x16xf32> to vector<4x8x16xf32>
    %28 = vector.extract_strided_slice %25 {offsets = [8, 0, 0], sizes = [4, 8, 16], strides = [1, 1, 1]} : vector<12x8x16xf32> to vector<4x8x16xf32>
    %c0_12 = arith.constant 0 : index
    %c0_13 = arith.constant 0 : index
    %29 = vector.load %arg7[%c0_12, %c0_13] : memref<16x16xf32, #tpu.memory_space<vmem>>, vector<16x16xf32>
    %30 = tpu.transpose %26, [0, 2, 1] : vector<4x8x16xf32> -> vector<4x16x8xf32>
    "tpu.trace_start"() <{level = 10 : i32, message = "hqd,hdk->hqk"}> : () -> ()
    %cst_14 = arith.constant dense<0.000000e+00> : vector<4x16x16xf32>
    %31 = tpu.matmul %30, %27, %cst_14 {dimension_numbers = #tpu.dot_dimension_numbers<[2], [1], [1], [2], [0, 0, 0, 1, 1, 2], [0], [0]>} : vector<4x16x8xf32>, vector<4x8x16xf32>, vector<4x16x16xf32> -> vector<4x16x16xf32>
    "tpu.trace_stop"() : () -> ()
    %32 = vector.shape_cast %29 : vector<16x16xf32> to vector<1x16x16xf32>
    %33 = vector.broadcast %32 : vector<1x16x16xf32> to vector<4x16x16xf32>
    %34 = arith.addf %31, %33 : vector<4x16x16xf32>
    %cst_15 = arith.constant dense<0xFF800000> : vector<4x16xf32>
    %35 = vector.multi_reduction <maximumf>, %34, %cst_15 [2] : vector<4x16x16xf32> to vector<4x16xf32>
    %36 = vector.shape_cast %35 : vector<4x16xf32> to vector<4x16x1xf32>
    %37 = vector.broadcast %36 : vector<4x16x1xf32> to vector<4x16x16xf32>
    %38 = arith.subf %34, %37 : vector<4x16x16xf32>
    %39 = math.exp %38 : vector<4x16x16xf32>
    %cst_16 = arith.constant dense<0.000000e+00> : vector<4x16xf32>
    %40 = vector.multi_reduction <add>, %39, %cst_16 [2] : vector<4x16x16xf32> to vector<4x16xf32>
    %41 = vector.shape_cast %40 : vector<4x16xf32> to vector<4x16x1xf32>
    %42 = tpu.reciprocal %41 : vector<4x16x1xf32> -> vector<4x16x1xf32>
    %43 = vector.broadcast %42 : vector<4x16x1xf32> to vector<4x16x16xf32>
    %44 = arith.mulf %39, %43 : vector<4x16x16xf32>
    "tpu.trace_start"() <{level = 10 : i32, message = "hdk,hqk->hdq"}> : () -> ()
    %cst_17 = arith.constant dense<0.000000e+00> : vector<4x8x16xf32>
    %45 = tpu.matmul %28, %44, %cst_17 {dimension_numbers = #tpu.dot_dimension_numbers<[2], [2], [1], [1], [0, 0, 0, 1, 1, 1], [0], [0]>} : vector<4x8x16xf32>, vector<4x16x16xf32>, vector<4x8x16xf32> -> vector<4x8x16xf32>
    "tpu.trace_stop"() : () -> ()
    %46 = vector.shape_cast %45 : vector<4x8x16xf32> to vector<32x16xf32>
    %c0_18 = arith.constant 0 : index
    %c0_19 = arith.constant 0 : index
    %47 = vector.load %arg5[%c0_18, %c0_19] : memref<32x32xf32, #tpu.memory_space<vmem>>, vector<32x32xf32>
    %cst_20 = arith.constant dense<0.000000e+00> : vector<32x16xf32>
    %48 = tpu.matmul %47, %46, %cst_20 {dimension_numbers = #tpu.dot_dimension_numbers<[1], [0], [0], [1], [0, 0, 1, 1], [], []>} : vector<32x32xf32>, vector<32x16xf32>, vector<32x16xf32> -> vector<32x16xf32>
    %c0_21 = arith.constant 0 : index
    %c0_22 = arith.constant 0 : index
    %49 = vector.load %arg6[%c0_21, %c0_22] : memref<32x1xf32, #tpu.memory_space<vmem>>, vector<32x1xf32>
    %50 = vector.broadcast %49 : vector<32x1xf32> to vector<32x16xf32>
    %51 = arith.addf %48, %50 : vector<32x16xf32>
    %c0_23 = arith.constant 0 : index
    %c0_24 = arith.constant 0 : index
    %52 = vector.load %arg8[%c0_23, %c0_24] : memref<32x16xf32, #tpu.memory_space<vmem>>, vector<32x16xf32>
    tpu.vector_store %arg8[%c0_23, %c0_24], %51 {strides = array<i32>} : memref<32x16xf32, #tpu.memory_space<vmem>>, vector<32x16xf32>,
    return
  }
  func.func @transform_0(%arg0: i32) -> (i32, i32) {
    %c0_i32 = arith.constant 0 : i32
    %c0_i32_0 = arith.constant 0 : i32
    return %c0_i32, %arg0 : i32, i32
  }
  func.func @transform_1(%arg0: i32) -> (i32, i32) {
    %c0_i32 = arith.constant 0 : i32
    %c0_i32_0 = arith.constant 0 : i32
    %c0_i32_1 = arith.constant 0 : i32
    return %c0_i32, %c0_i32_0 : i32, i32
  }
  func.func @transform_2(%arg0: i32) -> (i32, i32) {
    %c0_i32 = arith.constant 0 : i32
    %c0_i32_0 = arith.constant 0 : i32
    %c0_i32_1 = arith.constant 0 : i32
    return %c0_i32, %c0_i32_0 : i32, i32
  }
  func.func @transform_3(%arg0: i32) -> (i32, i32) {
    %c0_i32 = arith.constant 0 : i32
    %c0_i32_0 = arith.constant 0 : i32
    %c0_i32_1 = arith.constant 0 : i32
    return %c0_i32, %c0_i32_0 : i32, i32
  }
  func.func @transform_4(%arg0: i32) -> (i32, i32) {
    %c0_i32 = arith.constant 0 : i32
    %c0_i32_0 = arith.constant 0 : i32
    %c0_i32_1 = arith.constant 0 : i32
    return %c0_i32, %c0_i32_0 : i32, i32
  }
  func.func @transform_5(%arg0: i32) -> (i32, i32) {
    %c0_i32 = arith.constant 0 : i32
    %c0_i32_0 = arith.constant 0 : i32
    %c0_i32_1 = arith.constant 0 : i32
    return %c0_i32, %c0_i32_0 : i32, i32
  }
  func.func @transform_6(%arg0: i32) -> (i32, i32) {
    %c0_i32 = arith.constant 0 : i32
    %c0_i32_0 = arith.constant 0 : i32
    %c0_i32_1 = arith.constant 0 : i32
    return %c0_i32, %c0_i32_0 : i32, i32
  }
  func.func @transform_7(%arg0: i32) -> (i32, i32) {
    %c0_i32 = arith.constant 0 : i32
    %c0_i32_0 = arith.constant 0 : i32
    return %c0_i32, %arg0 : i32, i32
  }
}

</mosaic_0001>

<bundles_post_ra>
// kernel: tpu_custom_call.1
= control target key start
LH: loop header
LB: loop body
LE: loop exit
PB: predicated region body
PF: predicated region fallthrough
CT: control target
= control target key end

     0   :  { %v1540_v0 = vmov 0   ;;  %vm30_vm0 = vcmask 130048   ;;  %vm142_vm1 = vcmask 261120   ;;  %vm434_vm2 = vcmask 64512   ;;  %s1796_s2 = inlined_call_operand.vmem [shape: f32[32,1], index: 2, kind: input, shape index: {}]   ;;  %s1797_s1 = inlined_call_operand.vmem [shape: f32[32,1], index: 1, kind: input, shape index: {}]   ;;  %s1798_s0 = inlined_call_operand.vmem [shape: f32[32,16], index: 0, kind: input, shape index: {}]   ;;  %s1799_s3 = inlined_call_operand.vmem [shape: f32[96,32], index: 3, kind: input, shape index: {}]   ;;  %s1800_s6 = inlined_call_operand.vmem [shape: f32[16,16], index: 6, kind: input, shape index: {}]   ;;  %s1801_s5 = inlined_call_operand.vmem [shape: f32[32,1], index: 5, kind: input, shape index: {}]   ;;  %s1802_s4 = inlined_call_operand.vmem [shape: f32[32,32], index: 4, kind: input, shape index: {}]   ;;  %s1803_s7 = inlined_call_operand.vmem [shape: f32[32,16], index: 7, kind: output, shape index: {}]  }
   0x1   :  { %1505 = vset.pattern.permute.xlu1 %v1540_v0  ;;  %1504 = vset.pattern.permute.xlu0 %v1540_v0  ;;  %v102_v1 = vld [vmem:[%s1796_s2] sm:$0xff]  ;;  %v103_v3 = vld [vmem:[%s1796_s2 + $0x8] sm:$0xff]  ;;  %v77_v5 = vld [vmem:[%s1797_s1 + $0x18] sm:$0xff]  ;;  %vm1542_vm3 = vmmov 0  }
   0x2   :  { %v74_v2 = vld [vmem:[%s1797_s1] sm:$0xff]  ;;  %108 = vperm.xlu1 %1505, %v102_v1   ;;  %v75_v4 = vld [vmem:[%s1797_s1 + $0x8] sm:$0xff]  ;;  %v76_v6 = vld [vmem:[%s1797_s1 + $0x10] sm:$0xff] }
   0x3   :  { %80 = vperm.xlu0 %1504, %v74_v2   ;;  %v105_v7 = vld [vmem:[%s1796_s2 + $0x18] sm:$0xff]  ;;  %v104_v8 = vld [vmem:[%s1796_s2 + $0x10] sm:$0xff]  ;;  %v26_v9 = vld [vmem:[%s1798_s0] sm:$0xff] }
   0x4   :  { %v27_v10 = vld [vmem:[%s1798_s0 + $0x8] sm:$0xff]  ;;  %v31_v11 = vsel %vm30_vm0, %v26_v9, 0.0  ;;  %v28_v13 = vld [vmem:[%s1798_s0 + $0x10] sm:$0xff]  ;;  %v130_v15 = vld [vmem:[%s1799_s3] sm:$0xff] }
   0x5   :  { %v32_v12 = vsel %vm30_vm0, %v27_v10, 0.0  ;;  %v34_v16 = vsel %vm30_vm0, %v28_v13, 0.0  ;;  %1388 = vmatprep.mubr.msk.f32.mxu0 %vm142_vm1, %v130_v15  ;;  %v29_v17 = vld [vmem:[%s1798_s0 + $0x18] sm:$0xff]  ;;  %v136_v15 = vld [vmem:[%s1799_s3 + $0x30] sm:$0xff]  ;;  %vm1742_vm4 = vmpackc.low %vm30_vm0, %vm30_vm0 }
   0x6   :  { %113 = vperm.xlu1 %1505, %v103_v3   ;;  %v33_v14 = vadd.f32 %v32_v12, %v31_v11  ;;  %v36_v19 = vsel %vm30_vm0, %v29_v17, 0.0  ;;  %v132_v11 = vld [vmem:[%s1799_s3 + $0x10] sm:$0xff]  ;;  %v133_v12 = vld [vmem:[%s1799_s3 + $0x18] sm:$0xff] }
   0x7   :  { %85 = vperm.xlu0 %1504, %v75_v4  }
   0x8   :  { %v35_v18 = vadd.f32 %v34_v16, %v33_v14  ;;  %v135_v14 = vld [vmem:[%s1799_s3 + $0x28] sm:$0xff]  ;;  %v137_v16 = vld [vmem:[%s1799_s3 + $0x38] sm:$0xff] }
   0xa   :  { %95 = vperm.xlu1 %1505, %v77_v5   ;;  %v37_v20 = vadd.f32 %v36_v19, %v35_v18 }
   0xb   :  { %90 = vperm.xlu0 %1504, %v76_v6  }
   0xc   :  { %v38_v21 = vrot.slane %v37_v20, 4 }
   0xe   :  { %123 = vperm.xlu1 %1505, %v105_v7   ;;  %v39_v22 = vadd.f32 %v38_v21, %v37_v20 }
   0xf   :  { %118 = vperm.xlu0 %1504, %v104_v8  }
  0x10   :  { %v40_v23 = vrot.slane %v39_v22, 2 }
  0x12   :  { %v41_v24 = vadd.f32 %v40_v23, %v39_v22 }
  0x14   :  { %v42_v25 = vrot.slane %v41_v24, 1 }
  0x16   :  { %v43_v26 = vadd.f32 %v42_v25, %v41_v24 }
  0x18   :  { %v45_v27 = vmul.f32 0.03125, %v43_v26 }
  0x1a   :  { %v46_v28 = vsub.f32 %v26_v9, %v45_v27  ;;  %v47_v29 = vsub.f32 %v27_v10, %v45_v27  ;;  %v48_v30 = vsub.f32 %v28_v13, %v45_v27  ;;  %v49_v33 = vsub.f32 %v29_v17, %v45_v27  ;;  %v131_v10 = vld [vmem:[%s1799_s3 + $0x8] sm:$0xff]  ;;  %v134_v13 = vld [vmem:[%s1799_s3 + $0x20] sm:$0xff] }
  0x1c   :  { %v50_v31 = vmul.f32 %v46_v28, %v46_v28  ;;  %v51_v32 = vmul.f32 %v47_v29, %v47_v29  ;;  %v52_v34 = vmul.f32 %v48_v30, %v48_v30  ;;  %v53_v38 = vmul.f32 %v49_v33, %v49_v33 }
  0x1e   :  { %v54_v35 = vsel %vm30_vm0, %v50_v31, 0.0  ;;  %v55_v36 = vsel %vm30_vm0, %v51_v32, 0.0  ;;  %v57_v39 = vsel %vm30_vm0, %v52_v34, 0.0  ;;  %v59_v41 = vsel %vm30_vm0, %v53_v38, 0.0  ;;  %v139_v34 = vld [vmem:[%s1799_s3 + $0x48] sm:$0xff]  ;;  %v304_v38 = vld [vmem:[%s1800_s6] sm:$0xff] }
  0x1f   :  { %v56_v37 = vadd.f32 %v55_v36, %v54_v35  ;;  %v140_v35 = vld [vmem:[%s1799_s3 + $0x50] sm:$0xff]  ;;  %v141_v36 = vld [vmem:[%s1799_s3 + $0x58] sm:$0xff] }
  0x21   :  { %v58_v40 = vadd.f32 %v57_v39, %v56_v37  ;;  %v305_v37 = vld [vmem:[%s1800_s6 + $0x8] sm:$0xff] }
  0x23   :  { %v60_v42 = vadd.f32 %v59_v41, %v58_v40 }
  0x25   :  { %v61_v43 = vrot.slane %v60_v42, 4 }
  0x27   :  { %v62_v44 = vadd.f32 %v61_v43, %v60_v42 }
  0x29   :  { %v63_v45 = vrot.slane %v62_v44, 2 }
  0x2b   :  { %v64_v46 = vadd.f32 %v63_v45, %v62_v44 }
  0x2d   :  { %v65_v47 = vrot.slane %v64_v46, 1 }
  0x2f   :  { %v66_v48 = vadd.f32 %v65_v47, %v64_v46 }
  0x31   :  { %v67_v49 = vmul.f32 0.03125, %v66_v48 }
  0x33   :  { %v68_v50 = vadd.f32 1e-05, %v67_v49 }
  0x35   :  { %1506 = vrsqrt.f32 %v68_v50 }
  0x3f   :  { %v1507_v51 = vpop.eup %1506 }
  0x40   :  { %v70_v52 = vmul.f32 %v1507_v51, %v46_v28  ;;  %v71_v55 = vmul.f32 %v1507_v51, %v47_v29  ;;  %v73_v62 = vmul.f32 %v1507_v51, %v49_v33  ;;  %v72_v63 = vmul.f32 %v1507_v51, %v48_v30  ;;  %v138_v33 = vld [vmem:[%s1799_s3 + $0x40] sm:$0xff] }
  0x81   :  { %v109_v53 = vpop.permute.xlu1 %108 }
  0x82   :  { %v81_v54 = vpop.permute.xlu0 %80 }
  0x83   :  { %v98_v56 = vmul.f32 %v81_v54, %v70_v52 }
  0x85   :  { %v114_v57 = vpop.permute.xlu1 %113  ;;  %v126_v60 = vadd.f32 %v109_v53, %v98_v56 }
  0x86   :  { %v86_v58 = vpop.permute.xlu0 %85 }
  0x87   :  { %v99_v59 = vmul.f32 %v86_v58, %v71_v55 }
  0x89   :  { %v127_v61 = vadd.f32 %v114_v57, %v99_v59  ;;  %v96_v0 = vpop.permute.xlu1 %95 }
  0x8a   :  { %v91_v1 = vpop.permute.xlu0 %90  ;;  %v101_v3 = vmul.f32 %v96_v0, %v73_v62 }
  0x8b   :  { %v1468_v2 = vpack.c.bf16 %v127_v61, %v126_v60  ;;  %v100_v4 = vmul.f32 %v91_v1, %v72_v63 }
  0x8d   :  { %1469 = vmatprep.subr.bf16.mxu0 %v1468_v2  ;;  %v124_v5 = vpop.permute.xlu1 %123 }
  0x8e   :  { %v119_v6 = vpop.permute.xlu0 %118  ;;  %1471 = vmatpush3.bf16.msra.mxu0 %v1468_v2  ;;  %v129_v7 = vadd.f32 %v124_v5, %v101_v3 }
  0x8f   :  { %v128_v8 = vadd.f32 %v119_v6, %v100_v4 }
  0x91   :  { %v1472_v9 = vpack.c.bf16 %v129_v7, %v128_v8 }
  0x93   :  { %1473 = vmatprep.subr.bf16.mxu0 %v1472_v9 }
  0x94   :  { %1475 = vmatpush3.bf16.msra.mxu0 %v1472_v9 }
  0x97   :  { %1389 = vmatmul.mubr.msk.f32.vlgmr.msra.gmra.mrb[0].mxu0 %vm142_vm1, %v131_v10 }
  0x98   :  { %1391 = vmatprep.mubr.msk.f32.mxu0 %vm142_vm1, %v132_v11 }
  0x9b   :  { %1392 = vmatmul.mubr.msk.f32.gmra.mrb[2].mxu0 %vm142_vm1, %v133_v12 }
  0x9c   :  { %1394 = vmatprep.mubr.msk.f32.mxu0 %vm142_vm1, %v134_v13 }
  0x9f   :  { %1395 = vmatmul.mubr.msk.f32.gmra.mrb[4].mxu0 %vm142_vm1, %v135_v14 }
  0xa0   :  { %1397 = vmatprep.mubr.msk.f32.mxu0 %vm142_vm1, %v136_v15 }
  0xa3   :  { %1398 = vmatmul.mubr.msk.f32.gmra.mrb[6].mxu0 %vm142_vm1, %v137_v16 }
  0xa4   :  { %1400 = vmatprep.mubr.msk.f32.mxu0 %vm142_vm1, %v138_v33 }
  0xa7   :  { %1401 = vmatmul.mubr.msk.f32.gmra.mrb[8].mxu0 %vm142_vm1, %v139_v34 }
  0xa8   :  { %1403 = vmatprep.mubr.msk.f32.mxu0 %vm142_vm1, %v140_v35 }
  0xab   :  { %1404 = vmatmul.mubr.msk.f32.gmra.mrb[10].mxu0 %vm142_vm1, %v141_v36 }
 0x16a   :  { %v1390_v17 = vpop.f32.mrb[0].mxu0 }
 0x16b   :  { %338 = vxpose.xlu1.b32.start.end [1/1] (short) (narrow) %v1390_v17, 16  ;;  %v245_v18 = vpop.f32.mrb[1].mxu0 }
 0x16c   :  { %306 = vxpose.xlu0.b32.start.end [1/1] (short) (narrow) %v245_v18, 16 }
 0x16e   :  { %v1393_v19 = vpop.f32.mrb[2].mxu0 }
 0x16f   :  { %v255_v20 = vpop.f32.mrb[3].mxu0 }
 0x171   :  { %370 = vxpose.xlu0.b32.start.end [1/1] (short) (narrow) %v255_v20, 16 }
 0x172   :  { %v1396_v21 = vpop.f32.mrb[4].mxu0 }
 0x173   :  { %v265_v22 = vpop.f32.mrb[5].mxu0 }
 0x174   :  { %1406 = vmatprep.subr.mxu1 %v265_v22 }
 0x175   :  { %1407 = vmatpush3.msra.mxu1 %v265_v22 }
 0x176   :  { %402 = vxpose.xlu0.b32.start.end [1/1] (short) (narrow) %v1393_v19, 16  ;;  %1411 = vmatprep.subr.mxu1 %v1396_v21  ;;  %v1399_v23 = vpop.f32.mrb[6].mxu0 }
 0x177   :  { %v275_v24 = vpop.f32.mrb[7].mxu0 }
 0x1eb   :  { %v354_v26 = vpop.trf.xlu1 }
 0x1ec   :  { %v322_v25 = vpop.trf.xlu0 }
 0x1ed   :  { %1408 = vmatprep.mubr.msk.f32.mxu1 %vm434_vm2, %v322_v25 }
 0x1ef   :  { %v355_v28 = vpop.trf.xlu1 }
 0x1f0   :  { %v323_v27 = vpop.trf.xlu0 }
 0x1f1   :  { %1409 = vmatmul.mubr.msk.f32.vlgmr.msra.gmra.mrb[0].mxu1 %vm434_vm2, %v323_v27 }
 0x1f2   :  { %1412 = vmatpush3.msra.mxu1 %v1396_v21  ;;  %1413 = vmatprep.mubr.msk.f32.mxu1 %vm434_vm2, %v354_v26 }
 0x1f3   :  { %1416 = vmatprep.subr.mxu1 %v275_v24 }
 0x1f4   :  { %v386_v29 = vpop.trf.xlu0 }
 0x1f5   :  { %1414 = vmatmul.mubr.msk.f32.vlgmr.msra.gmra.mrb[2].mxu1 %vm434_vm2, %v355_v28 }
 0x1f6   :  { %1417 = vmatpush3.msra.mxu1 %v275_v24  ;;  %1418 = vmatprep.mubr.msk.f32.mxu1 %vm434_vm2, %v386_v29 }
 0x1f7   :  { %1421 = vmatprep.subr.mxu1 %v1399_v23 }
 0x1f8   :  { %v387_v30 = vpop.trf.xlu0 }
 0x1f9   :  { %1419 = vmatmul.mubr.msk.f32.vlgmr.msra.gmra.mrb[4].mxu1 %vm434_vm2, %v387_v30 }
 0x1fa   :  { %1422 = vmatpush3.msra.mxu1 %v1399_v23 }
 0x1fc   :  { %v418_v31 = vpop.trf.xlu0 }
 0x1fd   :  { %1423 = vmatprep.mubr.msk.f32.mxu1 %vm434_vm2, %v418_v31 }
 0x200   :  { %v419_v32 = vpop.trf.xlu0 }
 0x201   :  { %1424 = vmatmul.mubr.msk.f32.vlgmr.msra.gmra.mrb[6].mxu1 %vm434_vm2, %v419_v32 }
 0x2c4   :  { %v1410_v39 = vpop.f32.mrb[0].mxu1 }
 0x2c5   :  { %v513_v40 = vadd.f32 %v1410_v39, %v305_v37  ;;  %v507_v41 = vpop.f32.mrb[1].mxu1  ;;  %v1168_v39 = vld [vmem:[%s1801_s5 + $0x8] sm:$0xff] }
 0x2c6   :  { %v508_v42 = vadd.f32 %v507_v41, %v304_v38  ;;  %v1169_v41 = vld [vmem:[%s1801_s5 + $0x10] sm:$0xff] }
 0x2c7   :  { %v762_v43 = vsel %vm30_vm0, %v513_v40, -inf }
 0x2c8   :  { %763 = vmax.xlane.f32.xlu1 %v762_v43  ;;  %v1415_v44 = vpop.f32.mrb[2].mxu1  ;;  %v759_v45 = vsel %vm30_vm0, %v508_v42, -inf  ;;  %v1402_v43 = vpop.f32.mrb[8].mxu0 }
 0x2c9   :  { %v594_v46 = vadd.f32 %v1415_v44, %v305_v37  ;;  %v588_v47 = vpop.f32.mrb[3].mxu1  ;;  %760 = vmax.xlane.f32.xlu0 %v759_v45  ;;  %v1543_v44 = vmov 0.0   ;;  %v285_v45 = vpop.f32.mrb[9].mxu0 }
 0x2ca   :  { %v589_v48 = vadd.f32 %v588_v47, %v304_v38  ;;  %1430 = vmatprep.mubr.msk.f32.mxu1 %vm1542_vm3, %v1543_v44  ;;  %1444 = vmatprep.mubr.msk.f32.mxu0 %vm1542_vm3, %v1543_v44  ;;  %v1405_v47 = vpop.f32.mrb[10].mxu0 }
 0x2cb   :  { %v768_v49 = vsel %vm30_vm0, %v594_v46, -inf }
 0x2cc   :  { %769 = vmax.xlane.f32.xlu1 %v768_v49  ;;  %v1420_v50 = vpop.f32.mrb[4].mxu1  ;;  %v765_v54 = vsel %vm30_vm0, %v589_v48, -inf }
 0x2cd   :  { %v669_v51 = vpop.f32.mrb[5].mxu1  ;;  %v675_v53 = vadd.f32 %v1420_v50, %v305_v37 }
 0x2ce   :  { %v670_v52 = vadd.f32 %v669_v51, %v304_v38 }
 0x2cf   :  { %v774_v56 = vsel %vm30_vm0, %v675_v53, -inf }
 0x2d0   :  { %766 = vmax.xlane.f32.xlu1 %v765_v54  ;;  %v771_v55 = vsel %vm30_vm0, %v670_v52, -inf }
 0x2d1   :  { %772 = vmax.xlane.f32.xlu0 %v771_v55 }
 0x2d4   :  { %775 = vmax.xlane.f32.xlu1 %v774_v56  ;;  %v1425_v57 = vpop.f32.mrb[6].mxu1 }
 0x2d5   :  { %v756_v58 = vadd.f32 %v1425_v57, %v305_v37  ;;  %v750_v59 = vpop.f32.mrb[7].mxu1 }
 0x2d6   :  { %v751_v60 = vadd.f32 %v750_v59, %v304_v38 }
 0x2d7   :  { %v780_v61 = vsel %vm30_vm0, %v756_v58, -inf }
 0x2d8   :  { %781 = vmax.xlane.f32.xlu1 %v780_v61  ;;  %v777_v62 = vsel %vm30_vm0, %v751_v60, -inf }
 0x2d9   :  { %778 = vmax.xlane.f32.xlu0 %v777_v62 }
 0x355   :  { %v764_v63 = vpop.xlane.xlu1 %763 }
 0x356   :  { %v784_v0 = vsub.f32 %v513_v40, %v764_v63  ;;  %v761_v1 = vpop.xlane.xlu0 %760  ;;  %v1541_v40 = vmov 0.0|0.0  }
 0x357   :  { %v783_v2 = vsub.f32 %v508_v42, %v761_v1  ;;  %1476 = vmatprep.subr.bf16.mxu1 %v1541_v40  ;;  %1484 = vmatprep.subr.bf16.mxu0 %v1541_v40  ;;  %v1167_v42 = vld [vmem:[%s1801_s5] sm:$0xff] }
 0x358   :  { %v793_v3 = vmul.f32 1.442695, %v784_v0 }
 0x359   :  { %v791_v4 = vmul.f32 1.442695, %v783_v2  ;;  %v770_v5 = vpop.xlane.xlu1 %769 }
 0x35a   :  { %1508 = vpow2.f32 %v793_v3  ;;  %v786_v6 = vsub.f32 %v594_v46, %v770_v5  ;;  %v1170_v46 = vld [vmem:[%s1801_s5 + $0x18] sm:$0xff] }
 0x35b   :  { %1510 = vpow2.f32 %v791_v4 }
 0x35c   :  { %v797_v7 = vmul.f32 1.442695, %v786_v6 }
 0x35d   :  { %v767_v8 = vpop.xlane.xlu1 %766 }
 0x35e   :  { %1512 = vpow2.f32 %v797_v7  ;;  %v785_v9 = vsub.f32 %v589_v48, %v767_v8  ;;  %v773_v10 = vpop.xlane.xlu0 %772  ;;  %v295_v48 = vpop.f32.mrb[11].mxu0 }
 0x35f   :  { %v787_v11 = vsub.f32 %v670_v52, %v773_v10 }
 0x360   :  { %v795_v12 = vmul.f32 1.442695, %v785_v9 }
 0x361   :  { %v799_v13 = vmul.f32 1.442695, %v787_v11  ;;  %v776_v14 = vpop.xlane.xlu1 %775 }
 0x362   :  { %1514 = vpow2.f32 %v795_v12  ;;  %v788_v15 = vsub.f32 %v675_v53, %v776_v14  ;;  %v1163_v14 = vld [vmem:[%s1802_s4] sm:$0xff] }
 0x363   :  { %1516 = vpow2.f32 %v799_v13 }
 0x364   :  { %v1698_v16 = vpop.eup %1508  ;;  %v801_v17 = vmul.f32 1.442695, %v788_v15 }
 0x365   :  { %v1700_v18 = vpop.eup %1510  ;;  %v782_v19 = vpop.xlane.xlu1 %781  ;;  %v810_v20 = vsel %vm30_vm0, %v1698_v16, 0.0 }
 0x366   :  { %1518 = vpow2.f32 %v801_v17  ;;  %v790_v21 = vsub.f32 %v756_v58, %v782_v19  ;;  %811 = vadd.xlane.f32.xlu1 %v810_v20  ;;  %v779_v22 = vpop.xlane.xlu0 %778  ;;  %v807_v23 = vsel %vm30_vm0, %v1700_v18, 0.0 }
 0x367   :  { %v789_v24 = vsub.f32 %v751_v60, %v779_v22  ;;  %808 = vadd.xlane.f32.xlu0 %v807_v23 }
 0x368   :  { %v1706_v25 = vpop.eup %1512  ;;  %v805_v26 = vmul.f32 1.442695, %v790_v21 }
 0x369   :  { %v803_v27 = vmul.f32 1.442695, %v789_v24  ;;  %v816_v28 = vsel %vm30_vm0, %v1706_v25, 0.0 }
 0x36a   :  { %1520 = vpow2.f32 %v805_v26  ;;  %817 = vadd.xlane.f32.xlu1 %v816_v28  ;;  %v1165_v26 = vld [vmem:[%s1802_s4 + $0x10] sm:$0xff] }
 0x36b   :  { %1522 = vpow2.f32 %v803_v27  ;;  %v1166_v27 = vld [vmem:[%s1802_s4 + $0x18] sm:$0xff] }
 0x36c   :  { %v1515_v29 = vpop.eup %1514 }
 0x36d   :  { %v813_v30 = vsel %vm30_vm0, %v1515_v29, 0.0  ;;  %v1711_v31 = vpop.eup %1516 }
 0x36e   :  { %814 = vadd.xlane.f32.xlu0 %v813_v30  ;;  %v819_v34 = vsel %vm30_vm0, %v1711_v31, 0.0 }
 0x370   :  { %v1519_v32 = vpop.eup %1518 }
 0x371   :  { %v822_v33 = vsel %vm30_vm0, %v1519_v32, 0.0 }
 0x372   :  { %823 = vadd.xlane.f32.xlu1 %v822_v33  ;;  %820 = vadd.xlane.f32.xlu0 %v819_v34 }
 0x374   :  { %v1716_v35 = vpop.eup %1520 }
 0x375   :  { %v1718_v36 = vpop.eup %1522  ;;  %v828_v37 = vsel %vm30_vm0, %v1716_v35, 0.0 }
 0x376   :  { %829 = vadd.xlane.f32.xlu1 %v828_v37  ;;  %v825_v38 = vsel %vm30_vm0, %v1718_v36, 0.0 }
 0x377   :  { %826 = vadd.xlane.f32.xlu0 %v825_v38 }
 0x387   :  { %1178 = vperm.xlu1 %1505, %v1168_v39  }
 0x38b   :  { %1183 = vperm.xlu1 %1505, %v1169_v41  }
 0x38d   :  { %1173 = vperm.xlu0 %1504, %v1167_v42  }
 0x391   :  { %1188 = vperm.xlu0 %1504, %v1170_v46  }
 0x3f3   :  { %v812_v49 = vpop.xlane.xlu1 %811 }
 0x3f4   :  { %1524 = vrcp.f32 %v812_v49  ;;  %v809_v50 = vpop.xlane.xlu0 %808 }
 0x3f5   :  { %1526 = vrcp.f32 %v809_v50 }
 0x3f7   :  { %v818_v51 = vpop.xlane.xlu1 %817 }
 0x3f8   :  { %1528 = vrcp.f32 %v818_v51 }
 0x3fb   :  { %v815_v52 = vpop.xlane.xlu0 %814 }
 0x3fc   :  { %1530 = vrcp.f32 %v815_v52 }
 0x3fe   :  { %v1525_v53 = vpop.eup %1524 }
 0x3ff   :  { %v1527_v54 = vpop.eup %1526  ;;  %v840_v55 = vmul.f32 %v1525_v53, %v1698_v16  ;;  %v824_v56 = vpop.xlane.xlu1 %823 }
 0x400   :  { %v821_v57 = vpop.xlane.xlu0 %820  ;;  %v839_v58 = vmul.f32 %v1527_v54, %v1700_v18  ;;  %1532 = vrcp.f32 %v824_v56 }
 0x401   :  { %1534 = vrcp.f32 %v821_v57 }
 0x402   :  { %v1477_v60 = vpack.c.bf16 %v840_v55, %v839_v58  ;;  %v1529_v62 = vpop.eup %1528 }
 0x403   :  { %v830_v61 = vpop.xlane.xlu1 %829  ;;  %v842_v1 = vmul.f32 %v1529_v62, %v1706_v25  ;;  %v1164_v25 = vld [vmem:[%s1802_s4 + $0x8] sm:$0xff] }
 0x404   :  { %1536 = vrcp.f32 %v830_v61  ;;  %1479 = vmatpush3.bf16.xpose.msk.msra.mxu1 %vm1742_vm4, %v1477_v60  ;;  %v827_v63 = vpop.xlane.xlu0 %826 }
 0x405   :  { %1538 = vrcp.f32 %v827_v63  ;;  %1480 = vmatprep.subr.bf16.mxu1 %v1541_v40 }
 0x406   :  { %v1531_v0 = vpop.eup %1530 }
 0x407   :  { %v841_v2 = vmul.f32 %v1531_v0, %v1515_v29  ;;  %v1179_v29 = vpop.permute.xlu1 %1178 }
 0x409   :  { %v1481_v3 = vpack.c.bf16 %v842_v1, %v841_v2 }
 0x40a   :  { %v1533_v4 = vpop.eup %1532 }
 0x40b   :  { %v1535_v5 = vpop.eup %1534  ;;  %v844_v6 = vmul.f32 %v1533_v4, %v1519_v32  ;;  %1431 = vmatmul.mubr.msk.f32.vlgmr.msra.gmra.mrb[8].mxu1 %vm30_vm0, %v285_v45 }
 0x40c   :  { %v843_v7 = vmul.f32 %v1535_v5, %v1711_v31  ;;  %1483 = vmatpush3.bf16.xpose.msk.msra.mxu1 %vm1742_vm4, %v1481_v3  ;;  %1437 = vmatprep.mubr.msk.f32.mxu1 %vm1542_vm3, %v1543_v44  ;;  %v1174_v28 = vpop.permute.xlu0 %1173 }
 0x40d   :  { %1488 = vmatprep.subr.bf16.mxu1 %v1541_v40 }
 0x40e   :  { %v1537_v8 = vpop.eup %1536  ;;  %v1485_v9 = vpack.c.bf16 %v844_v6, %v843_v7 }
 0x40f   :  { %v1539_v10 = vpop.eup %1538  ;;  %v846_v11 = vmul.f32 %v1537_v8, %v1716_v35 }
 0x410   :  { %v845_v12 = vmul.f32 %v1539_v10, %v1718_v36  ;;  %1487 = vmatpush3.bf16.xpose.msk.msra.mxu0 %vm1742_vm4, %v1485_v9  ;;  %v1189_v34 = vpop.permute.xlu0 %1188  ;;  %v1184_v36 = vpop.permute.xlu1 %1183 }
 0x412   :  { %v1489_v13 = vpack.c.bf16 %v846_v11, %v845_v12 }
 0x413   :  { %1438 = vmatmul.mubr.msk.f32.vlgmr.msra.gmra.mrb[10].mxu1 %vm30_vm0, %v1402_v43 }
 0x414   :  { %1491 = vmatpush3.bf16.xpose.msk.msra.mxu1 %vm1742_vm4, %v1489_v13  ;;  %1451 = vmatprep.mubr.msk.f32.mxu1 %vm1542_vm3, %v1543_v44 }
 0x417   :  { %1445 = vmatmul.mubr.msk.f32.vlgmr.msra.gmra.mrb[12].mxu0 %vm30_vm0, %v295_v48 }
 0x418   :  { %1462 = vmatprep.mubr.msk.f32.mxu0 %vm142_vm1, %v1163_v14 }
 0x41b   :  { %1452 = vmatmul.mubr.msk.f32.vlgmr.msra.gmra.mrb[12].mxu1 %vm30_vm0, %v1405_v47 }
 0x4de   :  { %v922_v15 = vpop.f32.mrb[8].mxu1 }
 0x4df   :  { %v1432_v16 = vpop.f32.mrb[9].mxu1 }
 0x4e6   :  { %v1001_v17 = vpop.f32.mrb[10].mxu1 }
 0x4e7   :  { %v1492_v18 = vpack.c.bf16 %v1001_v17, %v922_v15  ;;  %v1439_v19 = vpop.f32.mrb[11].mxu1 }
 0x4e9   :  { %1493 = vmatprep.subr.bf16.mxu0 %v1492_v18 }
 0x4ea   :  { %1495 = vmatpush3.bf16.msra.mxu0 %v1492_v18  ;;  %v1080_v20 = vpop.f32.mrb[12].mxu0 }
 0x4eb   :  { %v1446_v21 = vpop.f32.mrb[13].mxu0 }
 0x4ee   :  { %v1159_v22 = vpop.f32.mrb[12].mxu1 }
 0x4ef   :  { %v1496_v23 = vpack.c.bf16 %v1159_v22, %v1080_v20  ;;  %v1453_v24 = vpop.f32.mrb[13].mxu1 }
 0x4f1   :  { %1497 = vmatprep.subr.bf16.mxu0 %v1496_v23 }
 0x4f2   :  { %1499 = vmatpush3.bf16.msra.mxu0 %v1496_v23 }
 0x4f5   :  { %1463 = vmatmul.mubr.msk.f32.vlgmr.msra.gmra.mrb[14].mxu0 %vm142_vm1, %v1164_v25 }
 0x4f6   :  { %1465 = vmatprep.mubr.msk.f32.mxu0 %vm142_vm1, %v1165_v26 }
 0x4f9   :  { %1466 = vmatmul.mubr.msk.f32.gmra.mrb[16].mxu0 %vm142_vm1, %v1166_v27 }
 0x5c8   :  { %v1464_v30 = vpop.f32.mrb[14].mxu0 }
 0x5c9   :  { %v1275_v31 = vadd.f32 %v1464_v30, %v1179_v29  ;;  %v1269_v32 = vpop.f32.mrb[15].mxu0 }
 0x5ca   :  { %v1270_v33 = vadd.f32 %v1269_v32, %v1174_v28 }
 0x5cb   :  { %1289 = vst.msk [vmem:[%s1803_s7 + $0x8] sm:$0xff] %vm30_vm0, %v1275_v31 }
 0x5cc   :  { %1288 = vst.msk [vmem:[%s1803_s7] sm:$0xff] %vm30_vm0, %v1270_v33  ;;  %v1467_v35 = vpop.f32.mrb[16].mxu0 }
 0x5cd   :  { %v1285_v37 = vadd.f32 %v1467_v35, %v1189_v34  ;;  %v1279_v38 = vpop.f32.mrb[17].mxu0 }
 0x5ce   :  { %v1280_v39 = vadd.f32 %v1279_v38, %v1184_v36 }
 0x5cf   :  { %1291 = vst.msk [vmem:[%s1803_s7 + $0x18] sm:$0xff] %vm30_vm0, %v1285_v37 }
 0x5d0   :  { %1290 = vst.msk [vmem:[%s1803_s7 + $0x10] sm:$0xff] %vm30_vm0, %v1280_v39 }

</bundles_post_ra>
